<compile_context>
chip_gen: v5e
topology: v5e:2x2
jax: 0.10.0
libtpu: 0.0.40
codegen_flags: <defaults>
</compile_context>

<pallas_src>
import jax
import jax.numpy as jnp
from jax.experimental import pallas as pl
from jax.experimental.pallas import tpu as pltpu

LANES = 128  # vreg lane width


def _linear_kernel(sel_ref, x_ref, o_ref):
    # sel_ref: (256, 128) f32 weight/selection matrix, resident in VMEM
    # x_ref:   (tile_rows, 256) f32 interleaved (x0, x1) pairs, 128 rows of x per slab row
    # o_ref:   (tile_rows, 128) f32 lane-dense output
    o_ref[...] = jnp.dot(x_ref[...], sel_ref[...],
                         preferred_element_type=jnp.float32)


def _pick_tile(rows: int, tile_rows: int, min_steps: int = 4) -> int:
    """Tile size in slab rows: big (amortize ~0.35us/step), multiple of 8,
    but keep >= min_steps grid steps for v7x dual-TC sharding."""
    if rows < 8:
        return rows                       # single full-extent block
    t = min(tile_rows, pl.cdiv(rows, min_steps))
    t = max(8, (t // 8) * 8)              # sublane multiple
    t = min(t, (rows // 8) * 8)           # never exceed the array extent
    return t


def _linear_pallas(x: jax.Array, w: jax.Array, tile_rows: int) -> jax.Array:
    """x: (N, 2) f32 with N % 128 == 0; returns (N, 1) f32 = x @ w."""
    N = x.shape[0]
    rows = N // LANES

    # Zero-copy view: row k holds the 128 interleaved (x0, x1) pairs of
    # x rows 128k .. 128k+127.
    slab = x.reshape(rows, 2 * LANES)

    # Fold w into a (256, 128) selection matrix (tiny; built once per call).
    j = jnp.arange(LANES)
    sel = jnp.zeros((2 * LANES, LANES), jnp.float32)
    sel = sel.at[2 * j, j].set(w[0, 0]).at[2 * j + 1, j].set(w[1, 0])

    t = _pick_tile(rows, tile_rows)
    grid = (pl.cdiv(rows, t),)            # ragged last block is fine

    out2d = pl.pallas_call(
        _linear_kernel,
        out_shape=jax.ShapeDtypeStruct((rows, LANES), jnp.float32),
        grid=grid,
        in_specs=[
            # Weight/selection matrix: constant block index -> fetched once,
            # stays resident in VMEM across the whole grid.
            pl.BlockSpec((2 * LANES, LANES), lambda i: (0, 0)),
            # Input slab, streamed.
            pl.BlockSpec((t, 2 * LANES), lambda i: (i, 0)),
        ],
        out_specs=pl.BlockSpec((t, LANES), lambda i: (i, 0)),
        compiler_params=pltpu.CompilerParams(
            dimension_semantics=("parallel",),   # dual-TC sharding on v7x
        ),
    )(sel, slab)

    return out2d.reshape(N, 1)


def linear_forward(x: jax.Array, w: jax.Array, *,
                   tile_rows: int = 4096,
                   min_rows_for_pallas: int = 65536) -> jax.Array:
    """Computes torch.mm(FloatTensor(x), w) for x: (N, 2), w: (2, 1)."""
    # Module semantics force f32 (torch.FloatTensor); no-op for f32 callers.
    x = jnp.asarray(x, jnp.float32)
    w = jnp.asarray(w, jnp.float32)
    N, K = x.shape
    assert K == 2 and w.shape == (2, 1), f"expected (N,2)x(2,1), got {x.shape} x {w.shape}"

    # Small / mid N: a fused XLA elementwise is already at the HBM roofline.
    if N < max(min_rows_for_pallas, LANES):
        return x @ w

    n_main = (N // LANES) * LANES
    out_main = _linear_pallas(x if n_main == N else x[:n_main], w, tile_rows)
    if n_main == N:
        return out_main

    # TODO(synk): the misaligned-N tail path pays an extra slice+concat copy;
    # the aligned (common) path is copy-free.
    out_tail = x[n_main:] @ w
    return jnp.concatenate([out_main, out_tail], axis=0)


if __name__ == "__main__":
    key = jax.random.PRNGKey(0)
    k_w, k1, k2, k3 = jax.random.split(key, 4)

    # Parameter init mirroring torch.randn(2,1).uniform_(-1e-4, 1e-4) (forward-equivalent).
    w = jax.random.uniform(k_w, (2, 1), dtype=jnp.float32,
                           minval=-0.0001, maxval=0.0001)

    # 1) Small aligned case — force the Pallas path for the demo.
    x1 = jax.random.normal(k1, (1024, 2), dtype=jnp.float32)
    o1 = jax.block_until_ready(linear_forward(x1, w, min_rows_for_pallas=0))
    assert o1.shape == (1024, 1)
    assert jnp.allclose(o1, x1 @ w, atol=1e-6), "mismatch (aligned kernel path)"

    # 2) Ragged last grid block (rows not a multiple of the tile).
    x2 = jax.random.normal(k2, (1280, 2), dtype=jnp.float32)
    o2 = jax.block_until_ready(linear_forward(x2, w, min_rows_for_pallas=0))
    assert o2.shape == (1280, 1)
    assert jnp.allclose(o2, x2 @ w, atol=1e-6), "mismatch (ragged block path)"

    # 3) N not a multiple of 128: kernel prefix + XLA tail.
    x3 = jax.random.normal(k3, (1000, 2), dtype=jnp.float32)
    o3 = jax.block_until_ready(linear_forward(x3, w, min_rows_for_pallas=0))
    assert o3.shape == (1000, 1)
    assert jnp.allclose(o3, x3 @ w, atol=1e-6), "mismatch (misaligned-N path)"

    # 4) Default threshold: small N falls back to fused XLA.
    x4 = jax.random.normal(k1, (64, 2), dtype=jnp.float32)
    o4 = jax.block_until_ready(linear_forward(x4, w))
    assert o4.shape == (64, 1)
    assert jnp.allclose(o4, x4 @ w, atol=1e-6), "mismatch (XLA fallback path)"

    print("KERNEL_OK")
</pallas_src>

<mosaic_0001>
module attributes {stable_mosaic.version = 11 : i64} {
  func.func @_linear_kernel(%arg0: i32, %arg1: memref<256x128xf32, #tpu.memory_space<vmem>>, %arg2: memref<8x256xf32, #tpu.memory_space<vmem>>, %arg3: memref<8x128xf32, #tpu.memory_space<vmem>>) attributes {dimension_semantics = [#tpu.dimension_semantics<parallel>], iteration_bounds = array<i64: 1>, scalar_prefetch = 0 : i64, scratch_operands = 0 : i64, tpu.core_type = #tpu.core_type<tc>, window_params = [{pipeline_mode = #tpu.pipeline_mode<synchronous>, transform_indices = @transform_0, window_bounds = array<i64: 256, 128>}, {transform_indices = @transform_1, window_bounds = array<i64: 8, 256>}, {transform_indices = @transform_2, window_bounds = array<i64: 8, 128>}]} {
    %c0 = arith.constant 0 : index
    %c0_0 = arith.constant 0 : index
    %0 = vector.load %arg2[%c0, %c0_0] : memref<8x256xf32, #tpu.memory_space<vmem>>, vector<8x256xf32>
    %c0_1 = arith.constant 0 : index
    %c0_2 = arith.constant 0 : index
    %1 = vector.load %arg1[%c0_1, %c0_2] : memref<256x128xf32, #tpu.memory_space<vmem>>, vector<256x128xf32>
    %cst = arith.constant dense<0.000000e+00> : vector<8x128xf32>
    %2 = tpu.matmul %0, %1, %cst {dimension_numbers = #tpu.dot_dimension_numbers<[1], [0], [0], [1], [0, 0, 1, 1], [], []>} : vector<8x256xf32>, vector<256x128xf32>, vector<8x128xf32> -> vector<8x128xf32>
    %c0_3 = arith.constant 0 : index
    %c0_4 = arith.constant 0 : index
    %3 = vector.load %arg3[%c0_3, %c0_4] : memref<8x128xf32, #tpu.memory_space<vmem>>, vector<8x128xf32>
    tpu.vector_store %arg3[%c0_3, %c0_4], %2 {strides = array<i32>} : memref<8x128xf32, #tpu.memory_space<vmem>>, vector<8x128xf32>,
    return
  }
  func.func @transform_0(%arg0: i32) -> (i32, i32) {
    %c0_i32 = arith.constant 0 : i32
    %c0_i32_0 = arith.constant 0 : i32
    %c0_i32_1 = arith.constant 0 : i32
    return %c0_i32, %c0_i32_0 : i32, i32
  }
  func.func @transform_1(%arg0: i32) -> (i32, i32) {
    %c0_i32 = arith.constant 0 : i32
    %c0_i32_0 = arith.constant 0 : i32
    return %arg0, %c0_i32 : i32, i32
  }
  func.func @transform_2(%arg0: i32) -> (i32, i32) {
    %c0_i32 = arith.constant 0 : i32
    %c0_i32_0 = arith.constant 0 : i32
    return %arg0, %c0_i32 : i32, i32
  }
}

</mosaic_0001>

<bundles_post_ra>
// kernel: tpu_custom_call.1
= control target key start
LH: loop header
LB: loop body
LE: loop exit
PB: predicated region body
PF: predicated region fallthrough
CT: control target
= control target key end

     0   :  { %7 = vsyncpa [#allocation3], 0  ;;  %s247_s0 = inlined_call_operand.hbm [shape: f32[256,128], index: 0, kind: input, shape index: {}]   ;;  %s248_s1 = inlined_call_operand.hbm [shape: f32[8,256], index: 1, kind: input, shape index: {}]   ;;  %s249_s2 = inlined_call_operand.hbm [shape: f32[8,128], index: 2, kind: output, shape index: {}]  }
   0x1   :  { %8 = vsyncpa [#allocation6], 0 }
   0x2   :  { %9 = vsyncpa [#allocation4], 0  ;;  %s14_s11 = sshll.u32 %s247_s0, 4  ;;  %s218_s12 = smov [#allocation2]   ;;  %s15_s11 = int_to_ptr.hbm [resolvable:$true] %s14_s11 }
   0x3   :  { %s16_s13 = sshll.u32 %s218_s12, 4  ;;  %s28_s16 = sshll.u32 %s248_s1, 4  ;;  %s17_s13 = int_to_ptr.vmem [resolvable:$true] %s16_s13  ;;  %s29_s16 = int_to_ptr.hbm [resolvable:$true] %s28_s16 }
   0x4   :  { %s219_s17 = smov 128   ;;  %s220_s18 = smov 8  }
   0x5   :  { %22 = dma.hbm_to_vmem [thread:$0]  %s15_s11, 4096, %s17_s13, [#allocation3], %s219_s17, %s219_s17, %s220_s18  }
   0x6   :  { %s221_s19 = smov [#allocation5]  }
   0x7   :  { %s30_s20 = sshll.u32 %s221_s19, 4  ;;  %s31_s20 = int_to_ptr.vmem [resolvable:$true] %s30_s20 }
   0x8   :  { %33 = dma.hbm_to_vmem [thread:$0]  %s29_s16, 256, %s31_s20, [#allocation6]  }
   0x9   :  { %212 = dma.done.wait [#allocation3], 4096  }
   0xa   :  { %213 = vsyncadd [#allocation3], 4294963200 }
   0xb   :  { %214 = dma.done.wait [#allocation6], 256  }
   0xc   :  { %215 = vsyncadd [#allocation6], 4294967040  ;;  %v59_v0 = vld [vmem:[#allocation2 + $0x78] sm:$0xff]  ;;  %v58_v2 = vld [vmem:[#allocation2 + $0x70] sm:$0xff]  ;;  %s222_s0 = smov [#allocation7]   ;;  %s124_s23 = sshll.u32 %s249_s2, 4  ;;  %s125_s23 = int_to_ptr.hbm [resolvable:$true] %s124_s23 }
   0xd   :  { %v75_v1 = vld [vmem:[#allocation2 + $0xf8] sm:$0xff]  ;;  %76 = vmatpush.msra.mxu0 %v59_v0  ;;  %v74_v3 = vld [vmem:[#allocation2 + $0xf0] sm:$0xff]  ;;  %v57_v4 = vld [vmem:[#allocation2 + $0x68] sm:$0xff]  ;;  %s122_s1 = sshll.u32 %s222_s0, 4  ;;  %s123_s1 = int_to_ptr.vmem [resolvable:$true] %s122_s1 }
   0xe   :  { %96 = vmatpush.msra.mxu1 %v75_v1  ;;  %v73_v5 = vld [vmem:[#allocation2 + $0xe8] sm:$0xff]  ;;  %v56_v6 = vld [vmem:[#allocation2 + $0x60] sm:$0xff]  ;;  %v55_v8 = vld [vmem:[#allocation2 + $0x58] sm:$0xff] }
   0xf   :  { %77 = vmatpush.msra.mxu0 %v58_v2  ;;  %v72_v7 = vld [vmem:[#allocation2 + $0xe0] sm:$0xff]  ;;  %v71_v9 = vld [vmem:[#allocation2 + $0xd8] sm:$0xff]  ;;  %v54_v10 = vld [vmem:[#allocation2 + $0x50] sm:$0xff] }
  0x10   :  { %97 = vmatpush.msra.mxu1 %v74_v3  ;;  %v70_v11 = vld [vmem:[#allocation2 + $0xd0] sm:$0xff]  ;;  %v53_v12 = vld [vmem:[#allocation2 + $0x48] sm:$0xff]  ;;  %v52_v14 = vld [vmem:[#allocation2 + $0x40] sm:$0xff] }
  0x11   :  { %78 = vmatpush.msra.mxu0 %v57_v4  ;;  %v69_v13 = vld [vmem:[#allocation2 + $0xc8] sm:$0xff]  ;;  %v68_v15 = vld [vmem:[#allocation2 + $0xc0] sm:$0xff]  ;;  %v51_v16 = vld [vmem:[#allocation2 + $0x38] sm:$0xff] }
  0x12   :  { %98 = vmatpush.msra.mxu1 %v73_v5  ;;  %v67_v17 = vld [vmem:[#allocation2 + $0xb8] sm:$0xff]  ;;  %v50_v18 = vld [vmem:[#allocation2 + $0x30] sm:$0xff]  ;;  %v49_v20 = vld [vmem:[#allocation2 + $0x28] sm:$0xff] }
  0x13   :  { %79 = vmatpush.msra.mxu0 %v56_v6  ;;  %v66_v19 = vld [vmem:[#allocation2 + $0xb0] sm:$0xff]  ;;  %v65_v21 = vld [vmem:[#allocation2 + $0xa8] sm:$0xff]  ;;  %v48_v22 = vld [vmem:[#allocation2 + $0x20] sm:$0xff] }
  0x14   :  { %99 = vmatpush.msra.mxu1 %v72_v7  ;;  %v64_v23 = vld [vmem:[#allocation2 + $0xa0] sm:$0xff]  ;;  %v47_v24 = vld [vmem:[#allocation2 + $0x18] sm:$0xff]  ;;  %v46_v26 = vld [vmem:[#allocation2 + $0x10] sm:$0xff] }
  0x15   :  { %80 = vmatpush.msra.mxu0 %v55_v8  ;;  %v63_v25 = vld [vmem:[#allocation2 + $0x98] sm:$0xff]  ;;  %v62_v27 = vld [vmem:[#allocation2 + $0x90] sm:$0xff]  ;;  %v45_v28 = vld [vmem:[#allocation2 + $0x8] sm:$0xff] }
  0x16   :  { %100 = vmatpush.msra.mxu1 %v71_v9  ;;  %v61_v29 = vld [vmem:[#allocation2 + $0x88] sm:$0xff]  ;;  %v44_v30 = vld [vmem:[#allocation2] sm:$0xff] }
  0x17   :  { %81 = vmatpush.msra.mxu0 %v54_v10  ;;  %v60_v31 = vld [vmem:[#allocation2 + $0x80] sm:$0xff]  ;;  %v43_v33 = vld [vmem:[#allocation5 + $0x8] sm:$0xff] }
  0x18   :  { %101 = vmatpush.msra.mxu1 %v70_v11  ;;  %v42_v32 = vld [vmem:[#allocation5] sm:$0xff] }
  0x19   :  { %82 = vmatpush.msra.mxu0 %v53_v12 }
  0x1a   :  { %102 = vmatpush.msra.mxu1 %v69_v13 }
  0x1b   :  { %83 = vmatpush.msra.mxu0 %v52_v14 }
  0x1c   :  { %103 = vmatpush.msra.mxu1 %v68_v15 }
  0x1d   :  { %84 = vmatpush.msra.mxu0 %v51_v16 }
  0x1e   :  { %104 = vmatpush.msra.mxu1 %v67_v17 }
  0x1f   :  { %85 = vmatpush.msra.mxu0 %v50_v18 }
  0x20   :  { %105 = vmatpush.msra.mxu1 %v66_v19 }
  0x21   :  { %86 = vmatpush.msra.mxu0 %v49_v20 }
  0x22   :  { %106 = vmatpush.msra.mxu1 %v65_v21 }
  0x23   :  { %87 = vmatpush.msra.mxu0 %v48_v22 }
  0x24   :  { %107 = vmatpush.msra.mxu1 %v64_v23 }
  0x25   :  { %88 = vmatpush.msra.mxu0 %v47_v24 }
  0x26   :  { %108 = vmatpush.msra.mxu1 %v63_v25 }
  0x27   :  { %89 = vmatpush.msra.mxu0 %v46_v26 }
  0x28   :  { %109 = vmatpush.msra.mxu1 %v62_v27 }
  0x29   :  { %90 = vmatpush.msra.mxu0 %v45_v28 }
  0x2a   :  { %110 = vmatpush.msra.mxu1 %v61_v29 }
  0x2b   :  { %91 = vmatpush.msra.mxu0 %v44_v30 }
  0x2c   :  { %111 = vmatpush.msra.mxu1 %v60_v31  ;;  %92 = vmatmul.f32.vlgmr.msra.gmra.mxu0 %v42_v32 }
  0x2d   :  { %112 = vmatmul.f32.vlgmr.msra.gmra.mxu1 %v43_v33 }
  0xa9   :  { %v93_v34 = vpop.f32.mrf.mxu0 }
  0xaa   :  { %v113_v35 = vpop.f32.mrf.mxu1 }
  0xab   :  { %v114_v36 = vadd.f32 %v113_v35, %v93_v34 }
  0xad   :  { %116 = vst [vmem:[#allocation7] sm:$0xff] %v114_v36 }
  0xae   :  { %127 = dma.vmem_to_hbm [thread:$0]  %s123_s1, 128, %s125_s23, [#allocation4]  }
  0xaf   :  { %216 = dma.done.wait [#allocation4], 128  }
  0xb0   :  { %217 = vsyncadd [#allocation4], 4294967168 }
  0xb1   :  { %132 = vsyncpa [#allocation3], 1 }
  0xb2   :  { %133 = vsyncpa [#allocation6], 1 }
  0xb3   :  { %134 = vsyncpa [#allocation4], 1 }

</bundles_post_ra>
